<compile_context>
chip_gen: v5e
topology: v5e:2x2
jax: 0.10.0
libtpu: 0.0.40
codegen_flags: <defaults>
</compile_context>

<pallas_src>
import functools
import math

import jax
import jax.numpy as jnp
from jax.experimental import pallas as pl
from jax.experimental.pallas import tpu as pltpu

LN_EPS = 1e-5  # nn.LayerNorm default


def _round_up(v, m):
    return (v + m - 1) // m * m


def _patch_embed_kernel(y_ref, w_ref, b_ref, g_ref, beta_ref, o_ref, acc_ref, *,
                        rows_per_step, Wo, Wq, R, K2, E_true, m_chunk, fuse_k,
                        compute_dtype):
    # y_ref:    [1, Hq_pad*Wq, K2]    f32  space-to-depth image of batch b (revisited)
    # w_ref:    [R*R*K2, E_pad]       compute_dtype  regrouped conv weight
    # b_ref:    [1, E_pad]            f32  conv bias (zero-padded)
    # g_ref:    [1, E_pad]            f32  LN gamma (zero-padded)
    # beta_ref: [1, E_pad]            f32  LN beta  (zero-padded)
    # o_ref:    [1, rows*Wo, E_pad]   out_dtype
    # acc_ref:  [rows*Wq, E_pad]      f32  VMEM scratch (normalized slab, Wq-strided)
    E_pad = g_ref.shape[-1]
    n_win = R * R
    M_total = rows_per_step * Wq
    inv_e = 1.0 / float(E_true)

    # ---- hoisted loads (once per grid step, outside all unrolled loops)
    bias = b_ref[...]
    gamma = g_ref[...]
    beta = beta_ref[...]
    w_bytes = n_win * K2 * E_pad * jnp.dtype(compute_dtype).itemsize
    hoist_w = fuse_k or w_bytes <= (256 << 10)
    w_full = w_ref[...] if hoist_w else None
    col_mask = None
    if E_pad != E_true:
        col_mask = (jax.lax.broadcasted_iota(jnp.int32, (1, E_pad), 1)
                    < E_true).astype(jnp.float32)

    # y-row of the (dr=0, dc=0) window for the first output row of this step
    rpw = rows_per_step * Wq
    s0 = pl.program_id(1) * rpw
    g = math.gcd(rpw, 8)
    if g > 1:
        s0 = pl.multiple_of(s0, g)

    # ---- conv (slab matmuls) + fused LayerNorm, chunked along M
    for m0 in range(0, M_total, m_chunk):
        mc = min(m_chunk, M_total - m0)
        if fuse_k:
            slabs = []
            for dr in range(R):
                for dc in range(R):
                    start = s0 + (dr * Wq + dc) + m0
                    slabs.append(
                        y_ref[0, pl.ds(start, mc), :].astype(compute_dtype))
            lhs = slabs[0] if n_win == 1 else jnp.concatenate(slabs, axis=-1)
            acc = jnp.dot(lhs, w_full, preferred_element_type=jnp.float32)
        else:
            acc = None
            for dr in range(R):
                for dc in range(R):
                    i = dr * R + dc
                    start = s0 + (dr * Wq + dc) + m0
                    slab = y_ref[0, pl.ds(start, mc), :].astype(compute_dtype)
                    wi = (w_full[i * K2:(i + 1) * K2, :] if hoist_w
                          else w_ref[i * K2:(i + 1) * K2, :])
                    part = jnp.dot(slab, wi, preferred_element_type=jnp.float32)
                    acc = part if acc is None else acc + part

        # conv bias + two-pass LayerNorm (statistics over the TRUE embed dim;
        # pad columns of acc/bias are exactly zero, masked after centering).
        y = acc + bias
        mean = jnp.sum(y, axis=-1, keepdims=True) * inv_e
        yc = y - mean
        if col_mask is not None:
            yc = yc * col_mask
        var = jnp.sum(yc * yc, axis=-1, keepdims=True) * inv_e
        out = yc * jax.lax.rsqrt(var + LN_EPS) * gamma + beta
        acc_ref[m0:m0 + mc, :] = out

    # ---- compact Wq-strided rows into lane-dense [rows*Wo, E_pad] token stores
    if Wq == Wo:
        o_ref[0] = acc_ref[...].astype(o_ref.dtype)
    else:
        for r in range(rows_per_step):
            o_ref[0, r * Wo:(r + 1) * Wo, :] = (
                acc_ref[r * Wq:r * Wq + Wo, :].astype(o_ref.dtype))


def patch_embed_forward(x, params, *, patch_size, kernel_size, overlap=True,
                        compute_dtype=jnp.bfloat16, out_dtype=jnp.float32,
                        fuse_k=True, token_cap=1024):
    """x: [B, C, H, W] (NCHW). Returns (tokens [B, Ho*Wo, E], (Ho, Wo))."""
    B, C, H, W = x.shape
    S = patch_size
    if overlap:
        k, pad = kernel_size, kernel_size // 2
    else:
        k, pad = patch_size, 0
    assert H % S == 0 and W % S == 0
    Ho, Wo = H // S, W // S
    E = params["w"].shape[0]
    E_pad = _round_up(max(E, 128), 128)      # lane-dense output (multiple of 128)
    R = -(-k // S)                           # shifted windows per axis = ceil(k/S)
    k_pad_sz = R * S
    K2 = S * S * C                           # per-window contraction depth

    # ---- output-row tile: ~token_cap tokens per step, cdiv grid (no divisor req.)
    rows_per_step = max(1, min(Ho, token_cap // max(Wo, 1), 64))
    n_hblk = -(-Ho // rows_per_step)
    if n_hblk > 1 and (rows_per_step * Wo) % 8 != 0:
        for r in range(rows_per_step, 0, -1):   # prefer 8-aligned token blocks
            if (r * Wo) % 8 == 0:
                rows_per_step = r
                break
        n_hblk = -(-Ho // rows_per_step)

    # ---- space-to-depth reorg of the zero-padded image (no k*k blowup)
    Hq = -(-(H + 2 * pad) // S)
    Wq = -(-(W + 2 * pad) // S)
    Hq_pad = max(Hq, n_hblk * rows_per_step + R)   # tail-step slab reads in-bounds
    Hp2, Wp2 = Hq_pad * S, Wq * S
    xp = jnp.pad(x.astype(jnp.float32),
                 ((0, 0), (0, 0), (pad, Hp2 - H - pad), (pad, Wp2 - W - pad)))
    y = xp.reshape(B, C, Hq_pad, S, Wq, S).transpose(0, 2, 4, 3, 5, 1)
    y = y.reshape(B, Hq_pad * Wq, K2)        # f32 in HBM (robust dynamic slicing)

    # VMEM refs have no runtime OOB check -> guard the slab read bound here.
    max_read = (((n_hblk - 1) * rows_per_step + (R - 1)) * Wq + (R - 1)
                + rows_per_step * Wq)
    assert max_read <= Hq_pad * Wq, "slab window read would overrun the y block"

    # ---- regroup conv weight: rows ordered (dr, dc, sr, sc, c), phases >= k zeroed
    w = params["w"]                          # [E, C, k, k]
    wpad = jnp.zeros((E, C, k_pad_sz, k_pad_sz),
                     jnp.float32).at[:, :, :k, :k].set(w)
    wb = wpad.reshape(E, C, R, S, R, S).transpose(2, 4, 3, 5, 1, 0)
    wb = wb.reshape(R * R * K2, E)
    wb = jnp.pad(wb, ((0, 0), (0, E_pad - E))).astype(compute_dtype)

    bias = jnp.pad(params["b"].astype(jnp.float32), (0, E_pad - E)).reshape(1, E_pad)
    gamma = jnp.pad(params["gamma"].astype(jnp.float32), (0, E_pad - E)).reshape(1, E_pad)
    beta = jnp.pad(params["beta"].astype(jnp.float32), (0, E_pad - E)).reshape(1, E_pad)

    # ---- M-chunk: bound live-value bytes (slab operands + concat + f32 product)
    cbytes = jnp.dtype(compute_dtype).itemsize
    per_row = R * R * K2 * cbytes * 2 + E_pad * 8
    m_chunk = max(8, min(256, (160 * 1024 // per_row) // 8 * 8))

    kernel = functools.partial(
        _patch_embed_kernel, rows_per_step=rows_per_step, Wo=Wo, Wq=Wq, R=R,
        K2=K2, E_true=E, m_chunk=m_chunk, fuse_k=fuse_k,
        compute_dtype=compute_dtype)

    # Revisited per-batch input block: single-buffer it only when large, so the
    # small/test configs keep the default (well-tested) pipelining.
    y_block_bytes = Hq_pad * Wq * K2 * 4
    y_spec_kwargs = {}
    y_bufs = 2
    if y_block_bytes > (4 << 20):
        y_spec_kwargs["pipeline_mode"] = pl.Buffered(1)
        y_bufs = 1

    obytes = jnp.dtype(out_dtype).itemsize
    vmem_est = (y_block_bytes * y_bufs
                + R * R * K2 * E_pad * cbytes * 2
                + 3 * E_pad * 4 * 2
                + rows_per_step * Wq * E_pad * 4
                + rows_per_step * Wo * E_pad * obytes * 2)
    vmem_limit = int(min(max(vmem_est * 5 // 4, 32 << 20), 128 << 20))

    grid = (B, n_hblk)
    out = pl.pallas_call(
        kernel,
        out_shape=jax.ShapeDtypeStruct(
            (B, n_hblk * rows_per_step * Wo, E_pad), out_dtype),
        grid=grid,
        in_specs=[
            pl.BlockSpec((1, Hq_pad * Wq, K2), lambda b, h: (b, 0, 0),
                         **y_spec_kwargs),                        # per-batch, revisited
            pl.BlockSpec((R * R * K2, E_pad), lambda b, h: (0, 0)),  # resident weight
            pl.BlockSpec((1, E_pad), lambda b, h: (0, 0)),
            pl.BlockSpec((1, E_pad), lambda b, h: (0, 0)),
            pl.BlockSpec((1, E_pad), lambda b, h: (0, 0)),
        ],
        out_specs=pl.BlockSpec((1, rows_per_step * Wo, E_pad),
                               lambda b, h: (b, h, 0)),
        scratch_shapes=[pltpu.VMEM((rows_per_step * Wq, E_pad), jnp.float32)],
        compiler_params=pltpu.CompilerParams(
            dimension_semantics=("parallel", "parallel"),
            vmem_limit_bytes=vmem_limit),
    )(y, wb, bias, gamma, beta)

    tokens = out
    if tokens.shape[1] != Ho * Wo or E_pad != E:
        tokens = tokens[:, :Ho * Wo, :E]
    return tokens, (Ho, Wo)


def _reference(x, params, *, patch_size, kernel_size, overlap=True):
    """Pure-JAX reference of the PyTorch forward (NCHW conv + LayerNorm)."""
    pad = kernel_size // 2 if overlap else 0
    y = jax.lax.conv_general_dilated(
        x, params["w"],
        window_strides=(patch_size, patch_size),
        padding=[(pad, pad), (pad, pad)],
        dimension_numbers=("NCHW", "OIHW", "NCHW"),
    ) + params["b"][None, :, None, None]
    B, E, Ho, Wo = y.shape
    t = y.reshape(B, E, Ho * Wo).transpose(0, 2, 1)
    mean = jnp.mean(t, axis=-1, keepdims=True)
    var = jnp.mean((t - mean) ** 2, axis=-1, keepdims=True)
    t = (t - mean) / jnp.sqrt(var + LN_EPS)
    return t * params["gamma"] + params["beta"], (Ho, Wo)


if __name__ == "__main__":
    # Small config consistent with the module: img=16, patch=4, k=3, C=4, E=32.
    B, C, H, W = 2, 4, 16, 16
    patch_size, kernel_size, embed_dim = 4, 3, 32

    key = jax.random.PRNGKey(0)
    kx, kw, kb = jax.random.split(key, 3)
    x = jax.random.normal(kx, (B, C, H, W), dtype=jnp.float32)

    params = {
        "w": jax.random.normal(kw, (embed_dim, C, kernel_size, kernel_size),
                               dtype=jnp.float32) * 0.02,
        "b": jax.random.normal(kb, (embed_dim,), dtype=jnp.float32) * 0.02,
        "gamma": jnp.ones((embed_dim,), dtype=jnp.float32),
        "beta": jnp.zeros((embed_dim,), dtype=jnp.float32),
    }

    ref, (Hr, Wr) = _reference(x, params, patch_size=patch_size,
                               kernel_size=kernel_size)

    # Exact f32 path (tight tolerance).
    out32, (Ho, Wo) = patch_embed_forward(
        x, params, patch_size=patch_size, kernel_size=kernel_size,
        overlap=True, compute_dtype=jnp.float32)
    out32 = jax.block_until_ready(out32)
    assert out32.shape == (B, (H // patch_size) * (W // patch_size), embed_dim)
    assert (Ho, Wo) == (Hr, Wr) == (H // patch_size, W // patch_size)
    assert jnp.allclose(out32, ref, atol=1e-4, rtol=1e-4)

    # bf16-MXU path (f32 accumulation, f32 LayerNorm) — looser tolerance.
    outbf, _ = patch_embed_forward(
        x, params, patch_size=patch_size, kernel_size=kernel_size,
        overlap=True, compute_dtype=jnp.bfloat16)
    outbf = jax.block_until_ready(outbf)
    assert jnp.allclose(outbf, ref, atol=5e-2, rtol=5e-2)

    print("KERNEL_OK")
</pallas_src>

<mosaic_0001>
module attributes {stable_mosaic.version = 11 : i64} {
  func.func @_patch_embed_kernel(%arg0: i32, %arg1: i32, %arg2: memref<1x25x64xf32, #tpu.memory_space<vmem>>, %arg3: memref<64x128xf32, #tpu.memory_space<vmem>>, %arg4: memref<1x128xf32, #tpu.memory_space<vmem>>, %arg5: memref<1x128xf32, #tpu.memory_space<vmem>>, %arg6: memref<1x128xf32, #tpu.memory_space<vmem>>, %arg7: memref<1x16x128xf32, #tpu.memory_space<vmem>>, %arg8: memref<20x128xf32, #tpu.memory_space<vmem>>) attributes {dimension_semantics = [#tpu.dimension_semantics<parallel>, #tpu.dimension_semantics<parallel>], iteration_bounds = array<i64: 2, 1>, scalar_prefetch = 0 : i64, scratch_operands = 1 : i64, tpu.core_type = #tpu.core_type<tc>, window_params = [{transform_indices = @transform_0, window_bounds = array<i64: 1, 25, 64>}, {pipeline_mode = #tpu.pipeline_mode<synchronous>, transform_indices = @transform_1, window_bounds = array<i64: 64, 128>}, {pipeline_mode = #tpu.pipeline_mode<synchronous>, transform_indices = @transform_2, window_bounds = array<i64: 1, 128>}, {pipeline_mode = #tpu.pipeline_mode<synchronous>, transform_indices = @transform_3, window_bounds = array<i64: 1, 128>}, {pipeline_mode = #tpu.pipeline_mode<synchronous>, transform_indices = @transform_4, window_bounds = array<i64: 1, 128>}, {transform_indices = @transform_5, window_bounds = array<i64: 1, 16, 128>}]} {
    %c0 = arith.constant 0 : index
    %c0_0 = arith.constant 0 : index
    %0 = vector.load %arg4[%c0, %c0_0] : memref<1x128xf32, #tpu.memory_space<vmem>>, vector<1x128xf32>
    %c0_1 = arith.constant 0 : index
    %c0_2 = arith.constant 0 : index
    %1 = vector.load %arg5[%c0_1, %c0_2] : memref<1x128xf32, #tpu.memory_space<vmem>>, vector<1x128xf32>
    %c0_3 = arith.constant 0 : index
    %c0_4 = arith.constant 0 : index
    %2 = vector.load %arg6[%c0_3, %c0_4] : memref<1x128xf32, #tpu.memory_space<vmem>>, vector<1x128xf32>
    %c0_5 = arith.constant 0 : index
    %c0_6 = arith.constant 0 : index
    %3 = vector.load %arg3[%c0_5, %c0_6] : memref<64x128xf32, #tpu.memory_space<vmem>>, vector<64x128xf32>
    %4 = tpu.iota {dimensions = array<i32: 1>} : vector<1x128xi32>
    %c32_i32 = arith.constant 32 : i32
    %5 = vector.broadcast %c32_i32 : i32 to vector<1x128xi32>
    %6 = arith.cmpi slt, %4, %5 : vector<1x128xi32>
    %7 = arith.extui %6 : vector<1x128xi1> to vector<1x128xi32>
    %8 = arith.sitofp %7 : vector<1x128xi32> to vector<1x128xf32>
    %c20_i32 = arith.constant 20 : i32
    %9 = arith.muli %arg1, %c20_i32 : i32
    %10 = tpu.assume_multiple %9, 4 : i32
    %c0_i32 = arith.constant 0 : i32
    %11 = arith.addi %10, %c0_i32 : i32
    %c0_i32_7 = arith.constant 0 : i32
    %12 = arith.addi %11, %c0_i32_7 : i32
    %c0_8 = arith.constant 0 : index
    %13 = arith.index_cast %12 : i32 to index
    %c0_9 = arith.constant 0 : index
    %14 = vector.load %arg2[%c0_8, %13, %c0_9] : memref<1x25x64xf32, #tpu.memory_space<vmem>>, vector<1x20x64xf32>
    %15 = vector.shape_cast %14 : vector<1x20x64xf32> to vector<20x64xf32>
    %cst = arith.constant dense<0.000000e+00> : vector<20x128xf32>
    %16 = tpu.matmul %15, %3, %cst {dimension_numbers = #tpu.dot_dimension_numbers<[1], [0], [0], [1], [0, 0, 1, 1], [], []>} : vector<20x64xf32>, vector<64x128xf32>, vector<20x128xf32> -> vector<20x128xf32>
    %17 = vector.broadcast %0 : vector<1x128xf32> to vector<20x128xf32>
    %18 = arith.addf %16, %17 : vector<20x128xf32>
    %cst_10 = arith.constant dense<0.000000e+00> : vector<20xf32>
    %19 = vector.multi_reduction <add>, %18, %cst_10 [1] : vector<20x128xf32> to vector<20xf32>
    %20 = vector.shape_cast %19 : vector<20xf32> to vector<20x1xf32>
    %cst_11 = arith.constant 3.125000e-02 : f32
    %21 = vector.broadcast %cst_11 : f32 to vector<20x1xf32>
    %22 = arith.mulf %20, %21 : vector<20x1xf32>
    %23 = vector.broadcast %22 : vector<20x1xf32> to vector<20x128xf32>
    %24 = arith.subf %18, %23 : vector<20x128xf32>
    %25 = vector.broadcast %8 : vector<1x128xf32> to vector<20x128xf32>
    %26 = arith.mulf %24, %25 : vector<20x128xf32>
    %27 = arith.mulf %26, %26 : vector<20x128xf32>
    %cst_12 = arith.constant dense<0.000000e+00> : vector<20xf32>
    %28 = vector.multi_reduction <add>, %27, %cst_12 [1] : vector<20x128xf32> to vector<20xf32>
    %29 = vector.shape_cast %28 : vector<20xf32> to vector<20x1xf32>
    %cst_13 = arith.constant 3.125000e-02 : f32
    %30 = vector.broadcast %cst_13 : f32 to vector<20x1xf32>
    %31 = arith.mulf %29, %30 : vector<20x1xf32>
    %cst_14 = arith.constant 9.99999974E-6 : f32
    %32 = vector.broadcast %cst_14 : f32 to vector<20x1xf32>
    %33 = arith.addf %31, %32 : vector<20x1xf32>
    %34 = math.rsqrt %33 : vector<20x1xf32>
    %35 = vector.broadcast %34 : vector<20x1xf32> to vector<20x128xf32>
    %36 = arith.mulf %26, %35 : vector<20x128xf32>
    %37 = vector.broadcast %1 : vector<1x128xf32> to vector<20x128xf32>
    %38 = arith.mulf %36, %37 : vector<20x128xf32>
    %39 = vector.broadcast %2 : vector<1x128xf32> to vector<20x128xf32>
    %40 = arith.addf %38, %39 : vector<20x128xf32>
    %c0_15 = arith.constant 0 : index
    %c0_16 = arith.constant 0 : index
    %41 = vector.load %arg8[%c0_15, %c0_16] : memref<20x128xf32, #tpu.memory_space<vmem>>, vector<20x128xf32>
    tpu.vector_store %arg8[%c0_15, %c0_16], %40 {strides = array<i32>} : memref<20x128xf32, #tpu.memory_space<vmem>>, vector<20x128xf32>,
    %c0_17 = arith.constant 0 : index
    %c0_18 = arith.constant 0 : index
    %42 = vector.load %arg8[%c0_17, %c0_18] : memref<20x128xf32, #tpu.memory_space<vmem>>, vector<4x128xf32>
    %c0_19 = arith.constant 0 : index
    %c0_20 = arith.constant 0 : index
    %c0_21 = arith.constant 0 : index
    %43 = vector.load %arg7[%c0_19, %c0_20, %c0_21] : memref<1x16x128xf32, #tpu.memory_space<vmem>>, vector<1x4x128xf32>
    %44 = vector.shape_cast %43 : vector<1x4x128xf32> to vector<4x128xf32>
    %45 = vector.shape_cast %42 : vector<4x128xf32> to vector<1x4x128xf32>
    tpu.vector_store %arg7[%c0_19, %c0_20, %c0_21], %45 {strides = array<i32>} : memref<1x16x128xf32, #tpu.memory_space<vmem>>, vector<1x4x128xf32>,
    %c5 = arith.constant 5 : index
    %c0_22 = arith.constant 0 : index
    %46 = vector.load %arg8[%c5, %c0_22] : memref<20x128xf32, #tpu.memory_space<vmem>>, vector<4x128xf32>
    %c0_23 = arith.constant 0 : index
    %c4 = arith.constant 4 : index
    %c0_24 = arith.constant 0 : index
    %47 = vector.load %arg7[%c0_23, %c4, %c0_24] : memref<1x16x128xf32, #tpu.memory_space<vmem>>, vector<1x4x128xf32>
    %48 = vector.shape_cast %47 : vector<1x4x128xf32> to vector<4x128xf32>
    %49 = vector.shape_cast %46 : vector<4x128xf32> to vector<1x4x128xf32>
    tpu.vector_store %arg7[%c0_23, %c4, %c0_24], %49 {strides = array<i32>} : memref<1x16x128xf32, #tpu.memory_space<vmem>>, vector<1x4x128xf32>,
    %c10 = arith.constant 10 : index
    %c0_25 = arith.constant 0 : index
    %50 = vector.load %arg8[%c10, %c0_25] : memref<20x128xf32, #tpu.memory_space<vmem>>, vector<4x128xf32>
    %c0_26 = arith.constant 0 : index
    %c8 = arith.constant 8 : index
    %c0_27 = arith.constant 0 : index
    %51 = vector.load %arg7[%c0_26, %c8, %c0_27] : memref<1x16x128xf32, #tpu.memory_space<vmem>>, vector<1x4x128xf32>
    %52 = vector.shape_cast %51 : vector<1x4x128xf32> to vector<4x128xf32>
    %53 = vector.shape_cast %50 : vector<4x128xf32> to vector<1x4x128xf32>
    tpu.vector_store %arg7[%c0_26, %c8, %c0_27], %53 {strides = array<i32>} : memref<1x16x128xf32, #tpu.memory_space<vmem>>, vector<1x4x128xf32>,
    %c15 = arith.constant 15 : index
    %c0_28 = arith.constant 0 : index
    %54 = vector.load %arg8[%c15, %c0_28] : memref<20x128xf32, #tpu.memory_space<vmem>>, vector<4x128xf32>
    %c0_29 = arith.constant 0 : index
    %c12 = arith.constant 12 : index
    %c0_30 = arith.constant 0 : index
    %55 = vector.load %arg7[%c0_29, %c12, %c0_30] : memref<1x16x128xf32, #tpu.memory_space<vmem>>, vector<1x4x128xf32>
    %56 = vector.shape_cast %55 : vector<1x4x128xf32> to vector<4x128xf32>
    %57 = vector.shape_cast %54 : vector<4x128xf32> to vector<1x4x128xf32>
    tpu.vector_store %arg7[%c0_29, %c12, %c0_30], %57 {strides = array<i32>} : memref<1x16x128xf32, #tpu.memory_space<vmem>>, vector<1x4x128xf32>,
    return
  }
  func.func @transform_0(%arg0: i32, %arg1: i32) -> (i32, i32, i32) {
    %c0_i32 = arith.constant 0 : i32
    %c0_i32_0 = arith.constant 0 : i32
    %c0_i32_1 = arith.constant 0 : i32
    return %arg0, %c0_i32, %c0_i32_0 : i32, i32, i32
  }
  func.func @transform_1(%arg0: i32, %arg1: i32) -> (i32, i32) {
    %c0_i32 = arith.constant 0 : i32
    %c0_i32_0 = arith.constant 0 : i32
    %c0_i32_1 = arith.constant 0 : i32
    return %c0_i32, %c0_i32_0 : i32, i32
  }
  func.func @transform_2(%arg0: i32, %arg1: i32) -> (i32, i32) {
    %c0_i32 = arith.constant 0 : i32
    %c0_i32_0 = arith.constant 0 : i32
    %c0_i32_1 = arith.constant 0 : i32
    return %c0_i32, %c0_i32_0 : i32, i32
  }
  func.func @transform_3(%arg0: i32, %arg1: i32) -> (i32, i32) {
    %c0_i32 = arith.constant 0 : i32
    %c0_i32_0 = arith.constant 0 : i32
    %c0_i32_1 = arith.constant 0 : i32
    return %c0_i32, %c0_i32_0 : i32, i32
  }
  func.func @transform_4(%arg0: i32, %arg1: i32) -> (i32, i32) {
    %c0_i32 = arith.constant 0 : i32
    %c0_i32_0 = arith.constant 0 : i32
    %c0_i32_1 = arith.constant 0 : i32
    return %c0_i32, %c0_i32_0 : i32, i32
  }
  func.func @transform_5(%arg0: i32, %arg1: i32) -> (i32, i32, i32) {
    %c0_i32 = arith.constant 0 : i32
    %c0_i32_0 = arith.constant 0 : i32
    return %arg0, %arg1, %c0_i32 : i32, i32, i32
  }
}

</mosaic_0001>

<bundles_post_ra>
// kernel: tpu_custom_call.1
= control target key start
LH: loop header
LB: loop body
LE: loop exit
PB: predicated region body
PF: predicated region fallthrough
CT: control target
= control target key end

     0   :  { %10 = vsyncpa [#allocation4], 0  ;;  %s831_s0 = inlined_call_operand.vmem [shape: f32[2,25,64], index: 0, kind: input, shape index: {}]   ;;  %s832_s1 = inlined_call_operand.vmem [shape: f32[64,128], index: 1, kind: input, shape index: {}]   ;;  %s833_s2 = inlined_call_operand.vmem [shape: f32[1,128], index: 2, kind: input, shape index: {}]   ;;  %s834_s3 = inlined_call_operand.vmem [shape: f32[1,128], index: 3, kind: input, shape index: {}]   ;;  %s835_s4 = inlined_call_operand.vmem [shape: f32[1,128], index: 4, kind: input, shape index: {}]   ;;  %s836_s5 = inlined_call_operand.hbm [shape: f32[2,16,128], index: 5, kind: output, shape index: {}]  }
   0x1   :  { %12 = vsyncpa [#allocation4 + $0x1], 0  ;;  %s695_s18 = smov 0   ;;  %s697_s19 = smov 0  }
   0x2   :  { %s699_s20 = smov 0   ;;  %s701_s21 = smov 0  }
   0x3   :  { %s703_s22 = smov 0   ;;  %s705_s23 = smov 0  }
   0x4 LB: > { %s480_s24 = sadd.s32 4294967295, %s660_s23   ;;  %s481_s25 = sadd.s32 4294967294, %s660_s23   ;;  %s660_s23 = sphi %s705_s23, %s18_s23   ;;  %s656_s22 = sphi %s703_s22, %s843_s22   ;;  %s652_s21 = sphi %s701_s21, %s842_s21   ;;  %s648_s20 = sphi %s699_s20, %s841_s20   ;;  %s644_s19 = sphi %s697_s19, %s840_s19   ;;  %s640_s18 = sphi %s695_s18, %s839_s18  }
   0x5   : > { %s30_s26 = sadd.s32 1, %s656_s22  ;;  %s149_s27 = sadd.s32 1, %s648_s20 }
   0x6   : > { %p32_p0 = scmp.ge.s32.totalorder %s30_s26, 2  ;;  %p159_p1 = scmp.ne.s32.totalorder %s648_s20, %s644_s19 }
   0x7   : > { %p160_p2 = scmp.eq.s32.totalorder %s480_s24, 1  ;;  %p165_p3 = scmp.ne.s32.totalorder %s644_s19, %s640_s18 }
   0x8   : > { %s845_s26 = smov (%p32_p0, %s30_s26), 0  ;;  %p166_p5 = scmp.eq.s32.totalorder %s481_s25, 1 }
   0x9   : > { %p735_p4 = por %p160_p2, %p159_p1  ;;  %s144_s29 = ssub.s32 %s656_s22, %s845_s26 }
   0xa   : > { %p484_p6 = scmp.ge.s32.totalorder %s660_s23, 1  ;;  %p147_p7 = scmp.eq.s32.totalorder %s144_s29, 0 }
   0xb   : > { %p742_p8 = por %p166_p5, %p165_p3  ;;  %p204_p9 = scmp.lt.s32.totalorder %s660_s23, 3 }
   0xc   : > { %s748_s6 = scalar_select %p147_p7, %s648_s20, %s149_s27  }
   0xd   : > { %p205_p10 = pnand %p484_p6, %p204_p9 }
   0xe   : > { %p232_p11 = scmp.lt.s32.totalorder (!%p205_p10), %s652_s21, 1  ;;  %s229_s25 = sand.u32 (!%p205_p10), 1, %s644_s19  }
   0xf   : > { %208 = sbr.rel (%p205_p10) target bundleno = 460 (0x1cc), region = 40  ;;  %s485_s27 = sshll.u32 (!%p205_p10), %s229_s25, 4 }
  0x10   : > { %s231_s29 = scalar_lea.vmem (!%p205_p10), [#allocation3], %s485_s27  ;;  %s498_s7 = sshll.u32 (!%p205_p10), %s652_s21, 4 }
  0x11   : > { %s402_s11 = sshll.u32 (!%p205_p10), %s231_s29, 4  ;;  %s602_s17 = scalar_lea.hbm (!%p205_p10), %s836_s5, 32  ;;  %s403_s11 = int_to_ptr.vmem [resolvable:$true] %s402_s11 }
  0x14   : > { %v248_v0 = vld [vmem:[%s832_s1 + $0x38] sm:$0xff]  ;;  %v247_v1 = vld [vmem:[%s832_s1 + $0x30] sm:$0xff]  ;;  %v246_v2 = vld [vmem:[%s832_s1 + $0x28] sm:$0xff]  ;;  %s233_s13 = scalar_select %p232_p11, %s652_s21, 1  ;;  %vm262_vm0 = vcmask 523264   ;;  %vm302_vm1 = vcmask 1043456   ;;  %v249_v19 = vlaneseq }
  0x15   : > { %499 = vmatpush.msra.mxu1 %v248_v0  ;;  %500 = vmatpush.msra.mxu2 %v248_v0  ;;  %v245_v3 = vld [vmem:[%s832_s1 + $0x20] sm:$0xff]  ;;  %v244_v4 = vld [vmem:[%s832_s1 + $0x18] sm:$0xff]  ;;  %v243_v5 = vld [vmem:[%s832_s1 + $0x10] sm:$0xff]  ;;  %v662_v23 = vmov 0.0  }
  0x16   : > { %280 = vmatpush.msra.mxu0 %v248_v0  ;;  %s497_s24 = sshll.u32 %s233_s13, 5  ;;  %v242_v6 = vld [vmem:[%s832_s1 + $0x8] sm:$0xff]  ;;  %v241_v7 = vld [vmem:[%s832_s1] sm:$0xff]  ;;  %v250_v20 = vand.u32 127, %v249_v19  ;;  %s388_s13 = scalar_lea.sflag [#allocation4], %s229_s25 }
  0x17   : > { %501 = vmatpush.msra.mxu1 %v247_v1  ;;  %502 = vmatpush.msra.mxu2 %v247_v1  ;;  %s236_s10 = scalar_lea.vmem %s831_s0, %s497_s24  ;;  %v573_v11 = vld [vmem:[%s833_s2] ss:$0 sm:$0xff] }
  0x18   : > { %281 = vmatpush.msra.mxu0 %v247_v1  ;;  %v257_v8 = vld [vmem:[%s236_s10 + $0x8] sm:$0xff]  ;;  %v258_v9 = vld [vmem:[%s236_s10 + $0x10] sm:$0xf]  ;;  %v256_v10 = vld [vmem:[%s236_s10] sm:$0xff]  ;;  %vm251_vm2 = vcmp.lt.s32.totalorder %v250_v20, 32  ;;  %s401_s10 = scalar_lea.hbm %s836_s5, %s498_s7 }
  0x19   : > { %503 = vmatpush.msra.mxu1 %v246_v2  ;;  %504 = vmatpush.msra.mxu2 %v246_v2  ;;  %v488_v24 = vsel %vm251_vm2, 1.0, %v662_v23  ;;  %v574_v56 = vld [vmem:[%s834_s3] ss:$0 sm:$0xff]  ;;  %s404_s12 = sshll.u32 %s401_s10, 4  ;;  %s405_s12 = int_to_ptr.hbm [resolvable:$true] %s404_s12 }
  0x1a   : > { %282 = vmatpush.msra.mxu0 %v246_v2  ;;  %v575_v59 = vld [vmem:[%s835_s4] ss:$0 sm:$0xff]  ;;  %s596_s21 = sshra.s32 %s405_s12, 4  ;;  %s597_s21 = int_to_ptr.hbm [resolvable:$true] %s596_s21 }
  0x1b   : > { %505 = vmatpush.msra.mxu1 %v245_v3  ;;  %506 = vmatpush.msra.mxu2 %v245_v3  ;;  %s598_s14 = scalar_lea.hbm %s597_s21, 16  ;;  %p603_p1 = scmp.lt.s32.totalorder %s597_s21, %s836_s5 }
  0x1c   : > { %283 = vmatpush.msra.mxu0 %v245_v3  ;;  %p599_p12 = scmp.ne.s32.totalorder %s597_s21, %s598_s14  ;;  %p604_p2 = scmp.lt.s32.totalorder %s602_s17, %s598_s14 }
  0x1d   : > { %507 = vmatpush.msra.mxu1 %v244_v4  ;;  %508 = vmatpush.msra.mxu2 %v244_v4 }
  0x1e   : > { %284 = vmatpush.msra.mxu0 %v244_v4  ;;  %p600_p13 = pnand %p599_p12, %p735_p4  ;;  %p605_p3 = por %p604_p2, %p603_p1 }
  0x1f   : > { %509 = vmatpush.msra.mxu1 %v243_v5  ;;  %510 = vmatpush.msra.mxu2 %v243_v5 }
  0x20   : > { %285 = vmatpush.msra.mxu0 %v243_v5  ;;  %p601_p0 = pneg %p600_p13 }
  0x21   : > { %511 = vmatpush.msra.mxu1 %v242_v6  ;;  %512 = vmatpush.msra.mxu2 %v242_v6 }
  0x22   : > { %286 = vmatpush.msra.mxu0 %v242_v6  ;;  %p606_p5 = pnand %p605_p3, %p601_p0 }
  0x23   : > { %513 = vmatpush.msra.mxu1 %v241_v7  ;;  %514 = vmatpush.msra.mxu2 %v241_v7 }
  0x24   : > { %490 = vmatmul.msk.f32.vlgmr.msra.gmra.mxu1 %vm262_vm0, %v257_v8  ;;  %491 = vmatmul.msk.f32.vlgmr.msra.gmra.mxu2 %vm262_vm0, %v258_v9 }
  0x25   : > { %287 = vmatpush.msra.mxu0 %v241_v7 }
  0x26   : > { %489 = vmatmul.msk.f32.vlgmr.msra.gmra.mxu0 %vm262_vm0, %v256_v10 }
  0xa1   : > { %v292_v12 = vpop.f32.mrf.mxu1 }
  0xa2   : > { %v293_v13 = vadd.f32 %v573_v11, %v292_v12 }
  0xa3   : > { %v289_v17 = vpop.f32.mrf.mxu0 }
  0xa4   : > { %300 = vadd.xlane.f32.xlu1 %v293_v13  ;;  %v290_v18 = vadd.f32 %v573_v11, %v289_v17 }
  0xa7   : > { %v295_v14 = vpop.f32.mrf.mxu2 }
  0xa8   : > { %v296_v15 = vadd.f32 %v573_v11, %v295_v14 }
  0xaa   : > { %v303_v16 = vsel %vm302_vm1, %v296_v15, 0.0 }
  0xab   : > { %304 = vadd.xlane.f32.xlu0 %v303_v16 }
  0xb3   : > { %298 = vadd.xlane.f32.xlu0 %v290_v18 }
 0x117   : > { %v301_v21 = vpop.xlane.xlu1 %300 }
 0x118   : > { %v307_v22 = vmul.f32 0.03125, %v301_v21 }
 0x11a   : > { %v310_v25 = vsub.f32 %v293_v13, %v307_v22 }
 0x11c   : > { %v313_v26 = vmul.f32 %v488_v24, %v310_v25 }
 0x11e   : > { %v305_v27 = vpop.xlane.xlu0 %304  ;;  %v316_v28 = vmul.f32 %v313_v26, %v313_v26 }
 0x11f   : > { %v308_v29 = vmul.f32 0.03125, %v305_v27 }
 0x120   : > { %320 = vadd.xlane.f32.xlu2 %v316_v28 }
 0x121   : > { %v311_v30 = vsub.f32 %v296_v15, %v308_v29 }
 0x123   : > { %v314_v31 = vmul.f32 %v488_v24, %v311_v30 }
 0x125   : > { %v317_v32 = vmul.f32 %v314_v31, %v314_v31 }
 0x126   : > { %v299_v33 = vpop.xlane.xlu0 %298 }
 0x127   : > { %v306_v34 = vmul.f32 0.03125, %v299_v33  ;;  %v322_v35 = vsel %vm302_vm1, %v317_v32, 0.0 }
 0x128   : > { %323 = vadd.xlane.f32.xlu2 %v322_v35 }
 0x129   : > { %v309_v36 = vsub.f32 %v290_v18, %v306_v34 }
 0x12b   : > { %v312_v37 = vmul.f32 %v488_v24, %v309_v36 }
 0x12d   : > { %v315_v38 = vmul.f32 %v312_v37, %v312_v37 }
 0x12f   : > { %318 = vadd.xlane.f32.xlu1 %v315_v38 }
 0x193   : > { %v321_v39 = vpop.xlane.xlu2 %320 }
 0x194   : > { %v326_v40 = vmul.f32 0.03125, %v321_v39 }
 0x196   : > { %v329_v41 = vadd.f32 1e-05, %v326_v40 }
 0x198   : > { %576 = vrsqrt.f32 %v329_v41  ;;  %vm347_vm4 = vweird.f32 %v329_v41 }
 0x19b   : > { %v324_v42 = vpop.xlane.xlu2 %323 }
 0x19c   : > { %v327_v43 = vmul.f32 0.03125, %v324_v42 }
 0x19e   : > { %v577_v44 = vpop.eup %576  ;;  %v330_v45 = vadd.f32 1e-05, %v327_v43 }
 0x19f   : > { %v342_v46 = vmul.f32 %v577_v44, %v329_v41  ;;  %vm348_vm3 = vweird.f32 %v577_v44 }
 0x1a0   : > { %578 = vrsqrt.f32 %v330_v45  ;;  %vm349_vm5 = vmor %vm347_vm4, %vm348_vm3  ;;  %vm357_vm7 = vweird.f32 %v330_v45 }
 0x1a1   : > { %v343_v47 = vmul.f32 %v577_v44, %v342_v46 }
 0x1a2   : > { %v319_v48 = vpop.xlane.xlu1 %318 }
 0x1a3   : > { %v344_v49 = vmul.f32 0.5, %v343_v47  ;;  %v325_v50 = vmul.f32 0.03125, %v319_v48 }
 0x1a5   : > { %v345_v51 = vsub.f32 1.5, %v344_v49  ;;  %v328_v52 = vadd.f32 1e-05, %v325_v50 }
 0x1a6   : > { %v579_v53 = vpop.eup %578 }
 0x1a7   : > { %v346_v54 = vmul.f32 %v577_v44, %v345_v51  ;;  %v352_v55 = vmul.f32 %v579_v53, %v330_v45  ;;  %580 = vrsqrt.f32 %v328_v52  ;;  %vm358_vm6 = vweird.f32 %v579_v53 }
 0x1a8   : > { %vm359_vm8 = vmor %vm357_vm7, %vm358_vm6  ;;  %vm337_vm10 = vweird.f32 %v328_v52 }
 0x1a9   : > { %v350_v57 = vsel %vm349_vm5, %v577_v44, %v346_v54  ;;  %v353_v58 = vmul.f32 %v579_v53, %v352_v55 }
 0x1aa   : > { %v362_v60 = vmul.f32 %v350_v57, %v313_v26 }
 0x1ab   : > { %v354_v61 = vmul.f32 0.5, %v353_v58 }
 0x1ac   : > { %v368_v62 = vmul.f32 %v574_v56, %v362_v60 }
 0x1ad   : > { %v581_v63 = vpop.eup %580  ;;  %v355_v0 = vsub.f32 1.5, %v354_v61 }
 0x1ae   : > { %v374_v1 = vadd.f32 %v575_v59, %v368_v62  ;;  %v332_v2 = vmul.f32 %v581_v63, %v328_v52  ;;  %vm338_vm9 = vweird.f32 %v581_v63 }
 0x1af   : > { %v356_v3 = vmul.f32 %v579_v53, %v355_v0  ;;  %vm339_vm11 = vmor %vm337_vm10, %vm338_vm9 }
 0x1b0   : > { %377 = vst [vmem:[#allocation2 + $0x8] sm:$0xff] %v374_v1  ;;  %v333_v4 = vmul.f32 %v581_v63, %v332_v2 }
 0x1b1   : > { %v360_v5 = vsel %vm359_vm8, %v579_v53, %v356_v3 }
 0x1b2   : > { %v363_v6 = vmul.f32 %v360_v5, %v314_v31  ;;  %v334_v7 = vmul.f32 0.5, %v333_v4 }
 0x1b4   : > { %v369_v8 = vmul.f32 %v574_v56, %v363_v6  ;;  %v335_v9 = vsub.f32 1.5, %v334_v7 }
 0x1b6   : > { %v375_v10 = vadd.f32 %v575_v59, %v369_v8  ;;  %v336_v11 = vmul.f32 %v581_v63, %v335_v9 }
 0x1b7   : > { %v383_v12 = vld [vmem:[#allocation2 + $0xa] sm:$0xf] }
 0x1b8   : > { %378 = vst [vmem:[#allocation2 + $0x10] sm:$0xf] %v375_v10  ;;  %v340_v13 = vsel %vm339_vm11, %v581_v63, %v336_v11 }
 0x1b9   : > { %v361_v14 = vmul.f32 %v340_v13, %v312_v37  ;;  %384 = vst [vmem:[%s231_s29 + $0x8] sm:$0xf] %v383_v12 }
 0x1bb   : > { %v367_v15 = vmul.f32 %v574_v56, %v361_v14 }
 0x1bd   : > { %v373_v16 = vadd.f32 %v575_v59, %v367_v15 }
 0x1bf   : > { %376 = vst [vmem:[#allocation2] sm:$0xff] %v373_v16  ;;  %v385_v17 = vld [vmem:[#allocation2 + $0xf] sm:$0xf] }
 0x1c0   : > { %386 = vst [vmem:[%s231_s29 + $0xc] sm:$0xf] %v385_v17 }
 0x1c6   : > { %v379_v18 = vld [vmem:[#allocation2] sm:$0xf]  ;;  %v381_v19 = vld [vmem:[#allocation2 + $0x5] sm:$0xf] }
 0x1c7   : > { %380 = vst [vmem:[%s231_s29] sm:$0xf] %v379_v18 }
 0x1c8   : > { %382 = vst [vmem:[%s231_s29 + $0x4] sm:$0xf] %v381_v19 }
 0x1c9   : > { %609 = shalt.err (!%p606_p5)
}
 0x1ca   : > { %s663_s25 = smov 128   ;;  %s664_s29 = smov 8  }
 0x1cb   : > { %515 = dma.vmem_to_hbm [thread:$0]  (%p735_p4), %s403_s11, 256, %s405_s12, %s388_s13, %s663_s25, %s663_s25, %s664_s29  }
 0x1cc PF: > { %p521_p6 = scmp.ge.s32.totalorder %s660_s23, 2  ;;  %s419_s7 = sand.u32 1, %s640_s18  }
 0x1cd   : > { %s420_s8 = scalar_lea.sflag [#allocation4], %s419_s7 }
 0x1ce   : > { %p518_p7 = pnand %p521_p6, %p742_p8 }
 0x1d0   : > { %p519_p9 = pneg %p518_p7 }
 0x1d2   : > { %635 = dma.done.wait (%p519_p9), %s420_s8, 256  }
 0x1d3   : > { %637 = vsyncadd (%p519_p9), %s420_s8, 4294967040  ;;  %s18_s23 = sadd.s32 1, %s660_s23   ;;  %s839_s18 = smov %s644_s19 }
 0x1d4   : > { %p15_p10 = scmp.ge.s32.totalorder %s18_s23, 4   ;;  %s840_s19 = smov %s648_s20 }
 0x1d5   : > { %s841_s20 = smov %s748_s6  ;;  %s842_s21 = smov %s656_s22 }
 0x1d6   : > { %s843_s22 = smov %s845_s26  ;;  %17 = sbr.rel (!%p15_p10) target bundleno = 4 (0x4), region = 76 }
 0x1db   :  { %426 = vsyncpa [#allocation4], 1 }
 0x1dc   :  { %428 = vsyncpa [#allocation4 + $0x1], 1 }

</bundles_post_ra>
